<compile_context>
chip_gen: v5e
topology: v5e:2x2
jax: 0.10.0
libtpu: 0.0.40
codegen_flags: <defaults>
</compile_context>

<pallas_src>
import functools

import jax
import jax.numpy as jnp
from jax import lax
from jax.experimental import pallas as pl
from jax.experimental.pallas import tpu as pltpu

ENCODE_LAYER = 12
FILTER_SIZES = (2, 2, 2)
HIDDEN_SIZE = 768
N_CLASS = 2
NUM_FILTERS = 3
NUM_FILTER_TOTAL = NUM_FILTERS * len(FILTER_SIZES)

# Fused weight packing assumes all filter heights are equal (true for this module).
# TODO(synk): per-size packing would be needed if FILTER_SIZES ever differ.
assert len(set(FILTER_SIZES)) == 1
FILTER_H = FILTER_SIZES[0]


def textcnn_kernel(x_ref, wcat_ref, bconv_ref, wlin_ref, blin_ref, out_ref, y_scr):
    # x_ref:    [TB*12, 768]   flattened batch block (row r = b*12 + t)
    # wcat_ref: [2*9, 768]     fused conv weights, row j = dt*9 + (conv*3 + filter)
    # bconv_ref:[1, 9]         fused conv biases
    # wlin_ref: [9, 2]         classifier weight, pre-transposed
    # blin_ref: [1, 2]         ones-bias
    # out_ref:  [TB, 2]
    # y_scr:    VMEM [TB*12, 18] scratch for the fused matmul result
    tb = out_ref.shape[0]
    nf = NUM_FILTER_TOTAL
    win = ENCODE_LAYER - FILTER_H + 1  # number of valid window positions (11)

    # One large-M MXU matmul per grid step: all convs / taps / filters at once.
    y = lax.dot_general(
        x_ref[...], wcat_ref[...], (((1,), (1,)), ((), ())),
        preferred_element_type=jnp.float32)          # [TB*12, 18]
    y_scr[...] = y

    # Windowed conv accumulate + max-pool on the small result, using
    # sublane-strided reads: rows {t + dt + 12*b} form the (TB, 18) slab for
    # window position t, tap dt.
    pooled = None
    for t in range(win):
        acc_t = None
        for dt in range(FILTER_H):
            slab = y_scr[pl.ds(t + dt, tb, stride=ENCODE_LAYER), :]   # [TB, 18]
            part = slab[:, dt * nf:(dt + 1) * nf]                     # tap-dt columns
            acc_t = part if acc_t is None else acc_t + part
        pooled = acc_t if pooled is None else jnp.maximum(pooled, acc_t)

    # Conv bias + ReLU hoisted after the max (bias is constant over t; ReLU monotone).
    pooled = jnp.maximum(pooled + bconv_ref[...], 0.0)                # [TB, 9]

    out = lax.dot_general(
        pooled, wlin_ref[...], (((1,), (0,)), ((), ())),
        preferred_element_type=jnp.float32)                           # [TB, 2]
    out_ref[...] = (out + blin_ref[...]).astype(out_ref.dtype)


@functools.partial(jax.jit, static_argnames=("block_b", "input_dtype"))
def textcnn_forward(x, wconv, bconv, wlin, blin, block_b=256, input_dtype=None):
    """x: [B, 12, 768]; wconv: [n_convs, fh, F, D]; bconv: [n_convs, F];
    wlin: [n_class, 9] (nn.Linear weight); blin: [n_class]."""
    B = x.shape[0]
    n_convs, fh, nfil, hidden = wconv.shape
    nf = n_convs * nfil

    # ---- wrapper-side layout plumbing (outside the kernel, essentially free) ----
    # Fused conv slab: row j = dt*nf + (conv*F + filter)  -> matches torch.cat order.
    wcat = jnp.transpose(wconv, (1, 0, 2, 3)).reshape(fh * nf, hidden)
    bconv2 = bconv.reshape(1, nf)
    wlin_t = jnp.transpose(wlin)          # [nf, n_class]
    blin2 = blin.reshape(1, N_CLASS)

    # Optional bandwidth lever for v6e/v7x: cast matmul inputs to bf16
    # (accumulation stays f32 via preferred_element_type; epilogue stays f32).
    if input_dtype is not None:
        x = x.astype(input_dtype)
        wcat = wcat.astype(input_dtype)

    # Batch blocking: one block per grid step.
    tb = B if B <= block_b else block_b
    bp = pl.cdiv(B, tb) * tb
    if bp != B:
        x = jnp.pad(x, ((0, bp - B), (0, 0), (0, 0)))
    x_flat = x.reshape(bp * ENCODE_LAYER, hidden)     # row r = b*12 + t

    out = pl.pallas_call(
        textcnn_kernel,
        out_shape=jax.ShapeDtypeStruct((bp, N_CLASS), jnp.float32),
        grid_spec=pltpu.PrefetchScalarGridSpec(
            num_scalar_prefetch=0,
            grid=(bp // tb,),
            in_specs=[
                pl.BlockSpec((tb * ENCODE_LAYER, hidden), lambda b: (b, 0)),
                pl.BlockSpec(wcat.shape, lambda b: (0, 0)),
                pl.BlockSpec(bconv2.shape, lambda b: (0, 0)),
                pl.BlockSpec(wlin_t.shape, lambda b: (0, 0)),
                pl.BlockSpec(blin2.shape, lambda b: (0, 0)),
            ],
            out_specs=pl.BlockSpec((tb, N_CLASS), lambda b: (b, 0)),
            scratch_shapes=[
                pltpu.VMEM((tb * ENCODE_LAYER, fh * nf), jnp.float32),
            ],
        ),
        compiler_params=pltpu.CompilerParams(
            dimension_semantics=("parallel",),
            vmem_limit_bytes=48 * 1024 * 1024,
        ),
    )(x_flat, wcat, bconv2, wlin_t, blin2)
    return out[:B]


def textcnn_ref(x, wconv, bconv, wlin, blin):
    """Pure-JAX reference mirroring the PyTorch forward."""
    pooled = []
    for i, fh in enumerate(FILTER_SIZES):
        L = ENCODE_LAYER - fh + 1
        acc = bconv[i][None, None, :]
        for dt in range(fh):
            acc = acc + jnp.einsum('btd,fd->btf', x[:, dt:dt + L, :], wconv[i, dt])
        h = jnp.maximum(acc, 0.0)
        pooled.append(jnp.max(h, axis=1))            # MaxPool2d((L, 1))
    h_pool = jnp.concatenate(pooled, axis=1)          # [B, 9]
    return h_pool @ wlin.T + blin[None, :]


if __name__ == "__main__":
    key = jax.random.PRNGKey(0)
    kx, kw, kb, kl = jax.random.split(key, 4)

    B = 2
    x = jax.random.normal(kx, (B, ENCODE_LAYER, HIDDEN_SIZE), jnp.float32)

    # Synthetic parameters matching nn.Conv2d / nn.Linear shapes in __init__.
    wconv = 0.02 * jax.random.normal(
        kw, (len(FILTER_SIZES), FILTER_H, NUM_FILTERS, HIDDEN_SIZE), jnp.float32)
    bconv = 0.1 * jax.random.normal(kb, (len(FILTER_SIZES), NUM_FILTERS), jnp.float32)
    wlin = 0.1 * jax.random.normal(kl, (N_CLASS, NUM_FILTER_TOTAL), jnp.float32)
    blin = jnp.ones((N_CLASS,), jnp.float32)          # nn.Parameter(torch.ones([n_class]))

    out = textcnn_forward(x, wconv, bconv, wlin, blin)
    jax.block_until_ready(out)

    ref = textcnn_ref(x, wconv, bconv, wlin, blin)
    assert out.shape == (B, N_CLASS)
    assert jnp.allclose(out, ref, atol=1e-4, rtol=1e-4), (out, ref)
    print("KERNEL_OK")
</pallas_src>

<mosaic_0001>
module attributes {stable_mosaic.version = 11 : i64} {
  func.func @textcnn_kernel(%arg0: i32, %arg1: memref<24x768xf32, #tpu.memory_space<vmem>>, %arg2: memref<18x768xf32, #tpu.memory_space<vmem>>, %arg3: memref<1x9xf32, #tpu.memory_space<vmem>>, %arg4: memref<9x2xf32, #tpu.memory_space<vmem>>, %arg5: memref<1x2xf32, #tpu.memory_space<vmem>>, %arg6: memref<2x2xf32, #tpu.memory_space<vmem>>, %arg7: memref<24x18xf32, #tpu.memory_space<vmem>>) attributes {dimension_semantics = [#tpu.dimension_semantics<parallel>], iteration_bounds = array<i64: 1>, scalar_prefetch = 0 : i64, scratch_operands = 1 : i64, tpu.core_type = #tpu.core_type<tc>, window_params = [{transform_indices = @transform_0, window_bounds = array<i64: 24, 768>}, {pipeline_mode = #tpu.pipeline_mode<synchronous>, transform_indices = @transform_1, window_bounds = array<i64: 18, 768>}, {pipeline_mode = #tpu.pipeline_mode<synchronous>, transform_indices = @transform_2, window_bounds = array<i64: 1, 9>}, {pipeline_mode = #tpu.pipeline_mode<synchronous>, transform_indices = @transform_3, window_bounds = array<i64: 9, 2>}, {pipeline_mode = #tpu.pipeline_mode<synchronous>, transform_indices = @transform_4, window_bounds = array<i64: 1, 2>}, {transform_indices = @transform_5, window_bounds = array<i64: 2, 2>}]} {
    %c0 = arith.constant 0 : index
    %c0_0 = arith.constant 0 : index
    %0 = vector.load %arg1[%c0, %c0_0] : memref<24x768xf32, #tpu.memory_space<vmem>>, vector<24x768xf32>
    %c0_1 = arith.constant 0 : index
    %c0_2 = arith.constant 0 : index
    %1 = vector.load %arg2[%c0_1, %c0_2] : memref<18x768xf32, #tpu.memory_space<vmem>>, vector<18x768xf32>
    %cst = arith.constant dense<0.000000e+00> : vector<24x18xf32>
    %2 = tpu.matmul %0, %1, %cst {dimension_numbers = #tpu.dot_dimension_numbers<[1], [1], [0], [0], [0, 0, 1, 0], [], []>} : vector<24x768xf32>, vector<18x768xf32>, vector<24x18xf32> -> vector<24x18xf32>
    %c0_3 = arith.constant 0 : index
    %c0_4 = arith.constant 0 : index
    %3 = vector.load %arg7[%c0_3, %c0_4] : memref<24x18xf32, #tpu.memory_space<vmem>>, vector<24x18xf32>
    tpu.vector_store %arg7[%c0_3, %c0_4], %2 {strides = array<i32>} : memref<24x18xf32, #tpu.memory_space<vmem>>, vector<24x18xf32>,
    %c0_5 = arith.constant 0 : index
    %c0_6 = arith.constant 0 : index
    %4 = tpu.strided_load %arg7[%c0_5, %c0_6] {strides = array<i32: 12, 1>} : memref<24x18xf32, #tpu.memory_space<vmem>>, vector<2x18xf32>
    %5 = vector.extract_strided_slice %4 {offsets = [0, 0], sizes = [2, 9], strides = [1, 1]} : vector<2x18xf32> to vector<2x9xf32>
    %c1 = arith.constant 1 : index
    %c0_7 = arith.constant 0 : index
    %6 = tpu.strided_load %arg7[%c1, %c0_7] {strides = array<i32: 12, 1>} : memref<24x18xf32, #tpu.memory_space<vmem>>, vector<2x18xf32>
    %7 = vector.extract_strided_slice %6 {offsets = [0, 9], sizes = [2, 9], strides = [1, 1]} : vector<2x18xf32> to vector<2x9xf32>
    %8 = arith.addf %5, %7 : vector<2x9xf32>
    %c1_8 = arith.constant 1 : index
    %c0_9 = arith.constant 0 : index
    %9 = tpu.strided_load %arg7[%c1_8, %c0_9] {strides = array<i32: 12, 1>} : memref<24x18xf32, #tpu.memory_space<vmem>>, vector<2x18xf32>
    %10 = vector.extract_strided_slice %9 {offsets = [0, 0], sizes = [2, 9], strides = [1, 1]} : vector<2x18xf32> to vector<2x9xf32>
    %c2 = arith.constant 2 : index
    %c0_10 = arith.constant 0 : index
    %11 = tpu.strided_load %arg7[%c2, %c0_10] {strides = array<i32: 12, 1>} : memref<24x18xf32, #tpu.memory_space<vmem>>, vector<2x18xf32>
    %12 = vector.extract_strided_slice %11 {offsets = [0, 9], sizes = [2, 9], strides = [1, 1]} : vector<2x18xf32> to vector<2x9xf32>
    %13 = arith.addf %10, %12 : vector<2x9xf32>
    %14 = arith.maximumf %8, %13 : vector<2x9xf32>
    %c2_11 = arith.constant 2 : index
    %c0_12 = arith.constant 0 : index
    %15 = tpu.strided_load %arg7[%c2_11, %c0_12] {strides = array<i32: 12, 1>} : memref<24x18xf32, #tpu.memory_space<vmem>>, vector<2x18xf32>
    %16 = vector.extract_strided_slice %15 {offsets = [0, 0], sizes = [2, 9], strides = [1, 1]} : vector<2x18xf32> to vector<2x9xf32>
    %c3 = arith.constant 3 : index
    %c0_13 = arith.constant 0 : index
    %17 = tpu.strided_load %arg7[%c3, %c0_13] {strides = array<i32: 12, 1>} : memref<24x18xf32, #tpu.memory_space<vmem>>, vector<2x18xf32>
    %18 = vector.extract_strided_slice %17 {offsets = [0, 9], sizes = [2, 9], strides = [1, 1]} : vector<2x18xf32> to vector<2x9xf32>
    %19 = arith.addf %16, %18 : vector<2x9xf32>
    %20 = arith.maximumf %14, %19 : vector<2x9xf32>
    %c3_14 = arith.constant 3 : index
    %c0_15 = arith.constant 0 : index
    %21 = tpu.strided_load %arg7[%c3_14, %c0_15] {strides = array<i32: 12, 1>} : memref<24x18xf32, #tpu.memory_space<vmem>>, vector<2x18xf32>
    %22 = vector.extract_strided_slice %21 {offsets = [0, 0], sizes = [2, 9], strides = [1, 1]} : vector<2x18xf32> to vector<2x9xf32>
    %c4 = arith.constant 4 : index
    %c0_16 = arith.constant 0 : index
    %23 = tpu.strided_load %arg7[%c4, %c0_16] {strides = array<i32: 12, 1>} : memref<24x18xf32, #tpu.memory_space<vmem>>, vector<2x18xf32>
    %24 = vector.extract_strided_slice %23 {offsets = [0, 9], sizes = [2, 9], strides = [1, 1]} : vector<2x18xf32> to vector<2x9xf32>
    %25 = arith.addf %22, %24 : vector<2x9xf32>
    %26 = arith.maximumf %20, %25 : vector<2x9xf32>
    %c4_17 = arith.constant 4 : index
    %c0_18 = arith.constant 0 : index
    %27 = tpu.strided_load %arg7[%c4_17, %c0_18] {strides = array<i32: 12, 1>} : memref<24x18xf32, #tpu.memory_space<vmem>>, vector<2x18xf32>
    %28 = vector.extract_strided_slice %27 {offsets = [0, 0], sizes = [2, 9], strides = [1, 1]} : vector<2x18xf32> to vector<2x9xf32>
    %c5 = arith.constant 5 : index
    %c0_19 = arith.constant 0 : index
    %29 = tpu.strided_load %arg7[%c5, %c0_19] {strides = array<i32: 12, 1>} : memref<24x18xf32, #tpu.memory_space<vmem>>, vector<2x18xf32>
    %30 = vector.extract_strided_slice %29 {offsets = [0, 9], sizes = [2, 9], strides = [1, 1]} : vector<2x18xf32> to vector<2x9xf32>
    %31 = arith.addf %28, %30 : vector<2x9xf32>
    %32 = arith.maximumf %26, %31 : vector<2x9xf32>
    %c5_20 = arith.constant 5 : index
    %c0_21 = arith.constant 0 : index
    %33 = tpu.strided_load %arg7[%c5_20, %c0_21] {strides = array<i32: 12, 1>} : memref<24x18xf32, #tpu.memory_space<vmem>>, vector<2x18xf32>
    %34 = vector.extract_strided_slice %33 {offsets = [0, 0], sizes = [2, 9], strides = [1, 1]} : vector<2x18xf32> to vector<2x9xf32>
    %c6 = arith.constant 6 : index
    %c0_22 = arith.constant 0 : index
    %35 = tpu.strided_load %arg7[%c6, %c0_22] {strides = array<i32: 12, 1>} : memref<24x18xf32, #tpu.memory_space<vmem>>, vector<2x18xf32>
    %36 = vector.extract_strided_slice %35 {offsets = [0, 9], sizes = [2, 9], strides = [1, 1]} : vector<2x18xf32> to vector<2x9xf32>
    %37 = arith.addf %34, %36 : vector<2x9xf32>
    %38 = arith.maximumf %32, %37 : vector<2x9xf32>
    %c6_23 = arith.constant 6 : index
    %c0_24 = arith.constant 0 : index
    %39 = tpu.strided_load %arg7[%c6_23, %c0_24] {strides = array<i32: 12, 1>} : memref<24x18xf32, #tpu.memory_space<vmem>>, vector<2x18xf32>
    %40 = vector.extract_strided_slice %39 {offsets = [0, 0], sizes = [2, 9], strides = [1, 1]} : vector<2x18xf32> to vector<2x9xf32>
    %c7 = arith.constant 7 : index
    %c0_25 = arith.constant 0 : index
    %41 = tpu.strided_load %arg7[%c7, %c0_25] {strides = array<i32: 12, 1>} : memref<24x18xf32, #tpu.memory_space<vmem>>, vector<2x18xf32>
    %42 = vector.extract_strided_slice %41 {offsets = [0, 9], sizes = [2, 9], strides = [1, 1]} : vector<2x18xf32> to vector<2x9xf32>
    %43 = arith.addf %40, %42 : vector<2x9xf32>
    %44 = arith.maximumf %38, %43 : vector<2x9xf32>
    %c7_26 = arith.constant 7 : index
    %c0_27 = arith.constant 0 : index
    %45 = tpu.strided_load %arg7[%c7_26, %c0_27] {strides = array<i32: 12, 1>} : memref<24x18xf32, #tpu.memory_space<vmem>>, vector<2x18xf32>
    %46 = vector.extract_strided_slice %45 {offsets = [0, 0], sizes = [2, 9], strides = [1, 1]} : vector<2x18xf32> to vector<2x9xf32>
    %c8 = arith.constant 8 : index
    %c0_28 = arith.constant 0 : index
    %47 = tpu.strided_load %arg7[%c8, %c0_28] {strides = array<i32: 12, 1>} : memref<24x18xf32, #tpu.memory_space<vmem>>, vector<2x18xf32>
    %48 = vector.extract_strided_slice %47 {offsets = [0, 9], sizes = [2, 9], strides = [1, 1]} : vector<2x18xf32> to vector<2x9xf32>
    %49 = arith.addf %46, %48 : vector<2x9xf32>
    %50 = arith.maximumf %44, %49 : vector<2x9xf32>
    %c8_29 = arith.constant 8 : index
    %c0_30 = arith.constant 0 : index
    %51 = tpu.strided_load %arg7[%c8_29, %c0_30] {strides = array<i32: 12, 1>} : memref<24x18xf32, #tpu.memory_space<vmem>>, vector<2x18xf32>
    %52 = vector.extract_strided_slice %51 {offsets = [0, 0], sizes = [2, 9], strides = [1, 1]} : vector<2x18xf32> to vector<2x9xf32>
    %c9 = arith.constant 9 : index
    %c0_31 = arith.constant 0 : index
    %53 = tpu.strided_load %arg7[%c9, %c0_31] {strides = array<i32: 12, 1>} : memref<24x18xf32, #tpu.memory_space<vmem>>, vector<2x18xf32>
    %54 = vector.extract_strided_slice %53 {offsets = [0, 9], sizes = [2, 9], strides = [1, 1]} : vector<2x18xf32> to vector<2x9xf32>
    %55 = arith.addf %52, %54 : vector<2x9xf32>
    %56 = arith.maximumf %50, %55 : vector<2x9xf32>
    %c9_32 = arith.constant 9 : index
    %c0_33 = arith.constant 0 : index
    %57 = tpu.strided_load %arg7[%c9_32, %c0_33] {strides = array<i32: 12, 1>} : memref<24x18xf32, #tpu.memory_space<vmem>>, vector<2x18xf32>
    %58 = vector.extract_strided_slice %57 {offsets = [0, 0], sizes = [2, 9], strides = [1, 1]} : vector<2x18xf32> to vector<2x9xf32>
    %c10 = arith.constant 10 : index
    %c0_34 = arith.constant 0 : index
    %59 = tpu.strided_load %arg7[%c10, %c0_34] {strides = array<i32: 12, 1>} : memref<24x18xf32, #tpu.memory_space<vmem>>, vector<2x18xf32>
    %60 = vector.extract_strided_slice %59 {offsets = [0, 9], sizes = [2, 9], strides = [1, 1]} : vector<2x18xf32> to vector<2x9xf32>
    %61 = arith.addf %58, %60 : vector<2x9xf32>
    %62 = arith.maximumf %56, %61 : vector<2x9xf32>
    %c10_35 = arith.constant 10 : index
    %c0_36 = arith.constant 0 : index
    %63 = tpu.strided_load %arg7[%c10_35, %c0_36] {strides = array<i32: 12, 1>} : memref<24x18xf32, #tpu.memory_space<vmem>>, vector<2x18xf32>
    %64 = vector.extract_strided_slice %63 {offsets = [0, 0], sizes = [2, 9], strides = [1, 1]} : vector<2x18xf32> to vector<2x9xf32>
    %c11 = arith.constant 11 : index
    %c0_37 = arith.constant 0 : index
    %65 = tpu.strided_load %arg7[%c11, %c0_37] {strides = array<i32: 12, 1>} : memref<24x18xf32, #tpu.memory_space<vmem>>, vector<2x18xf32>
    %66 = vector.extract_strided_slice %65 {offsets = [0, 9], sizes = [2, 9], strides = [1, 1]} : vector<2x18xf32> to vector<2x9xf32>
    %67 = arith.addf %64, %66 : vector<2x9xf32>
    %68 = arith.maximumf %62, %67 : vector<2x9xf32>
    %c0_38 = arith.constant 0 : index
    %c0_39 = arith.constant 0 : index
    %69 = vector.load %arg3[%c0_38, %c0_39] : memref<1x9xf32, #tpu.memory_space<vmem>>, vector<1x9xf32>
    %70 = vector.broadcast %69 : vector<1x9xf32> to vector<2x9xf32>
    %71 = arith.addf %68, %70 : vector<2x9xf32>
    %cst_40 = arith.constant 0.000000e+00 : f32
    %72 = vector.broadcast %cst_40 : f32 to vector<2x9xf32>
    %73 = arith.maximumf %71, %72 : vector<2x9xf32>
    %c0_41 = arith.constant 0 : index
    %c0_42 = arith.constant 0 : index
    %74 = vector.load %arg4[%c0_41, %c0_42] : memref<9x2xf32, #tpu.memory_space<vmem>>, vector<9x2xf32>
    %cst_43 = arith.constant dense<0.000000e+00> : vector<2x2xf32>
    %75 = tpu.matmul %73, %74, %cst_43 {dimension_numbers = #tpu.dot_dimension_numbers<[1], [0], [0], [1], [0, 0, 1, 1], [], []>} : vector<2x9xf32>, vector<9x2xf32>, vector<2x2xf32> -> vector<2x2xf32>
    %c0_44 = arith.constant 0 : index
    %c0_45 = arith.constant 0 : index
    %76 = vector.load %arg5[%c0_44, %c0_45] : memref<1x2xf32, #tpu.memory_space<vmem>>, vector<1x2xf32>
    %77 = vector.broadcast %76 : vector<1x2xf32> to vector<2x2xf32>
    %78 = arith.addf %75, %77 : vector<2x2xf32>
    %c0_46 = arith.constant 0 : index
    %c0_47 = arith.constant 0 : index
    %79 = vector.load %arg6[%c0_46, %c0_47] : memref<2x2xf32, #tpu.memory_space<vmem>>, vector<2x2xf32>
    tpu.vector_store %arg6[%c0_46, %c0_47], %78 {strides = array<i32>} : memref<2x2xf32, #tpu.memory_space<vmem>>, vector<2x2xf32>,
    return
  }
  func.func @transform_0(%arg0: i32) -> (i32, i32) {
    %c0_i32 = arith.constant 0 : i32
    %c0_i32_0 = arith.constant 0 : i32
    return %arg0, %c0_i32 : i32, i32
  }
  func.func @transform_1(%arg0: i32) -> (i32, i32) {
    %c0_i32 = arith.constant 0 : i32
    %c0_i32_0 = arith.constant 0 : i32
    %c0_i32_1 = arith.constant 0 : i32
    return %c0_i32, %c0_i32_0 : i32, i32
  }
  func.func @transform_2(%arg0: i32) -> (i32, i32) {
    %c0_i32 = arith.constant 0 : i32
    %c0_i32_0 = arith.constant 0 : i32
    %c0_i32_1 = arith.constant 0 : i32
    return %c0_i32, %c0_i32_0 : i32, i32
  }
  func.func @transform_3(%arg0: i32) -> (i32, i32) {
    %c0_i32 = arith.constant 0 : i32
    %c0_i32_0 = arith.constant 0 : i32
    %c0_i32_1 = arith.constant 0 : i32
    return %c0_i32, %c0_i32_0 : i32, i32
  }
  func.func @transform_4(%arg0: i32) -> (i32, i32) {
    %c0_i32 = arith.constant 0 : i32
    %c0_i32_0 = arith.constant 0 : i32
    %c0_i32_1 = arith.constant 0 : i32
    return %c0_i32, %c0_i32_0 : i32, i32
  }
  func.func @transform_5(%arg0: i32) -> (i32, i32) {
    %c0_i32 = arith.constant 0 : i32
    %c0_i32_0 = arith.constant 0 : i32
    return %arg0, %c0_i32 : i32, i32
  }
}

</mosaic_0001>

<bundles_post_ra>
// kernel: textcnn_forward.1
= control target key start
LH: loop header
LB: loop body
LE: loop exit
PB: predicated region body
PF: predicated region fallthrough
CT: control target
= control target key end

     0   :  { %s559_s0 = inlined_call_operand.vmem [shape: f32[24,768], index: 0, kind: input, shape index: {}]   ;;  %s560_s1 = inlined_call_operand.vmem [shape: f32[18,768], index: 1, kind: input, shape index: {}]   ;;  %s561_s2 = inlined_call_operand.vmem [shape: f32[1,9], index: 2, kind: input, shape index: {}]   ;;  %s562_s3 = inlined_call_operand.vmem [shape: f32[9,2], index: 3, kind: input, shape index: {}]   ;;  %s563_s4 = inlined_call_operand.vmem [shape: f32[1,2], index: 4, kind: input, shape index: {}]   ;;  %s564_s5 = inlined_call_operand.hbm [shape: f32[2,2], index: 5, kind: output, shape index: {}]  }
   0x1   :  { %v51_v0 = vld [vmem:[%s560_s1 + $0x60] sm:$0x3]  ;;  %v52_v1 = vld [vmem:[%s560_s1 + $0x68] sm:$0x3]  ;;  %v53_v2 = vld [vmem:[%s560_s1 + $0x70] sm:$0x3] }
   0x2   :  { %70 = vmatpush.xpose.msra.mxu0 %v51_v0  ;;  %365 = vmatpush.xpose.msra.mxu3 %v51_v0  ;;  %v45_v3 = vld [vmem:[%s560_s1 + $0x30] sm:$0xff]  ;;  %v46_v4 = vld [vmem:[%s560_s1 + $0x38] sm:$0xff]  ;;  %v47_v5 = vld [vmem:[%s560_s1 + $0x40] sm:$0xff] }
   0x3   :  { %96 = vmatpush.xpose.msra.mxu1 %v52_v1  ;;  %122 = vmatpush.xpose.msra.mxu2 %v53_v2  ;;  %v39_v6 = vld [vmem:[%s560_s1] sm:$0xff]  ;;  %v40_v7 = vld [vmem:[%s560_s1 + $0x8] sm:$0xff]  ;;  %v41_v8 = vld [vmem:[%s560_s1 + $0x10] sm:$0xff] }
   0x4   :  { %v54_v9 = vld [vmem:[%s560_s1 + $0x78] sm:$0x3]  ;;  %v56_v10 = vld [vmem:[%s560_s1 + $0x88] sm:$0x3]  ;;  %v21_v11 = vld [vmem:[%s559_s0] sm:$0xff] }
   0x5   :  { %v33_v12 = vld [vmem:[%s559_s0 + $0x60] sm:$0xff]  ;;  %v22_v13 = vld [vmem:[%s559_s0 + $0x8] sm:$0xff]  ;;  %v23_v14 = vld [vmem:[%s559_s0 + $0x10] sm:$0xff] }
   0x6   :  { %71 = vmatpush.xpose.msra.mxu0 %v45_v3  ;;  %366 = vmatpush.xpose.msra.mxu3 %v45_v3  ;;  %v48_v15 = vld [vmem:[%s560_s1 + $0x48] sm:$0xff]  ;;  %v55_v16 = vld [vmem:[%s560_s1 + $0x80] sm:$0x3]  ;;  %v50_v17 = vld [vmem:[%s560_s1 + $0x58] sm:$0xff] }
   0x7   :  { %97 = vmatpush.xpose.msra.mxu1 %v46_v4  ;;  %123 = vmatpush.xpose.msra.mxu2 %v47_v5 }
   0xa   :  { %72 = vmatpush.xpose.msra.mxu0 %v39_v6  ;;  %367 = vmatpush.xpose.msra.mxu3 %v39_v6 }
   0xb   :  { %98 = vmatpush.xpose.msra.mxu1 %v40_v7  ;;  %124 = vmatpush.xpose.msra.mxu2 %v41_v8 }
   0xd   :  { %73 = vmatmul.f32.vlgmr.msra.gmra.mxu0 %v21_v11  ;;  %79 = vmatmul.f32.vlgmr.msra.gmra.mxu3 %v33_v12 }
   0xe   :  { %148 = vmatpush.xpose.msrb.mxu3 %v54_v9 }
   0xf   :  { %200 = vmatpush.xpose.msrb.mxu1 %v56_v10 }
  0x10   :  { %10 = vsyncpa [#allocation4], 0  ;;  %99 = vmatmul.f32.vlgmr.msra.gmra.mxu1 %v22_v13  ;;  %125 = vmatmul.f32.vlgmr.msra.gmra.mxu2 %v23_v14  ;;  %v49_v18 = vld [vmem:[%s560_s1 + $0x50] sm:$0xff]  ;;  %v42_v19 = vld [vmem:[%s560_s1 + $0x18] sm:$0xff]  ;;  %vm213_vm0 = vcmask 146432   ;;  %vm321_vm1 = vcmask 1040384  }
  0x11   :  { %174 = vmatpush.xpose.msrb.mxu0 %v55_v16  ;;  %368 = vmatpush.xpose.msrb.mxu2 %v56_v10  ;;  %v44_v20 = vld [vmem:[%s560_s1 + $0x28] sm:$0xff]  ;;  %v27_v21 = vld [vmem:[%s559_s0 + $0x30] sm:$0xff]  ;;  %v28_v22 = vld [vmem:[%s559_s0 + $0x38] sm:$0xff]  ;;  %vm317_vm2 = vcmask 72704   ;;  %s402_s21 = smov [#allocation3]   ;;  %s354_s25 = sshll.u32 %s564_s5, 4  ;;  %s355_s25 = int_to_ptr.hbm [resolvable:$true] %s354_s25 }
  0x12   :  { %149 = vmatpush.xpose.msrb.mxu3 %v48_v15  ;;  %v29_v23 = vld [vmem:[%s559_s0 + $0x40] sm:$0xff]  ;;  %v24_v24 = vld [vmem:[%s559_s0 + $0x18] sm:$0xff]  ;;  %v34_v27 = vld [vmem:[%s559_s0 + $0x68] sm:$0xff]  ;;  %s352_s22 = sshll.u32 %s402_s21, 4  ;;  %vm345_vm3 = vcmask 9216   ;;  %s353_s22 = int_to_ptr.vmem [resolvable:$true] %s352_s22 }
  0x13   :  { %201 = vmatpush.xpose.msrb.mxu1 %v50_v17  ;;  %v43_v25 = vld [vmem:[%s560_s1 + $0x20] sm:$0xff]  ;;  %v35_v28 = vld [vmem:[%s559_s0 + $0x70] sm:$0xff]  ;;  %v30_v29 = vld [vmem:[%s559_s0 + $0x48] sm:$0xff] }
  0x14   :  { %v25_v26 = vld [vmem:[%s559_s0 + $0x20] sm:$0xff]  ;;  %v31_v30 = vld [vmem:[%s559_s0 + $0x50] sm:$0xff]  ;;  %v26_v31 = vld [vmem:[%s559_s0 + $0x28] sm:$0xff] }
  0x15   :  { %175 = vmatpush.xpose.msrb.mxu0 %v49_v18  ;;  %369 = vmatpush.xpose.msrb.mxu2 %v50_v17  ;;  %v38_v32 = vld [vmem:[%s559_s0 + $0x88] sm:$0xff]  ;;  %v36_v33 = vld [vmem:[%s559_s0 + $0x78] sm:$0xff]  ;;  %v37_v34 = vld [vmem:[%s559_s0 + $0x80] sm:$0xff] }
  0x16   :  { %150 = vmatpush.xpose.msrb.mxu3 %v42_v19  ;;  %76 = vmatmul.f32.gmra.mxu0 %v27_v21  ;;  %v32_v35 = vld [vmem:[%s559_s0 + $0x58] sm:$0xff]  ;;  %s401_s0 = smov 119   ;;  %v312_v19 = vld [vmem:[%s562_s3 + $0x8] sm:$0x1] }
  0x17   :  { %202 = vmatpush.xpose.msrb.mxu1 %v44_v20 }
  0x18   :  { %102 = vmatmul.f32.gmra.mxu1 %v28_v22  ;;  %128 = vmatmul.f32.gmra.mxu2 %v29_v23 }
  0x19   :  { %151 = vmatmul.f32.vlgmr.msrb.gmra.mxu3 %v24_v24  ;;  %176 = vmatpush.xpose.msrb.mxu0 %v43_v25 }
  0x1a   :  { %370 = vmatpush.xpose.msrb.mxu2 %v44_v20  ;;  %v311_v20 = vld [vmem:[%s562_s3] sm:$0xff] }
  0x1e   :  { %177 = vmatmul.f32.vlgmr.msrb.gmra.mxu0 %v25_v26  ;;  %363 = vmatpush.msk.msra.mxu2 %vm321_vm1, %v312_v19 }
  0x20   :  { %105 = vmatmul.f32.gmra.mxu1 %v34_v27  ;;  %131 = vmatmul.f32.gmra.mxu2 %v35_v28 }
  0x21   :  { %154 = vmatmul.f32.gmra.mxu3 %v30_v29  ;;  %340 = vmatpush.msra.mxu2 %v311_v20 }
  0x26   :  { %180 = vmatmul.f32.gmra.mxu0 %v31_v30 }
  0x28   :  { %203 = vmatmul.f32.vlgmr.msrb.gmra.mxu1 %v26_v31  ;;  %209 = vmatmul.f32.vlgmr.msrb.gmra.mxu2 %v38_v32 }
  0x29   :  { %157 = vmatmul.f32.gmra.mxu3 %v36_v33 }
  0x2e   :  { %183 = vmatmul.f32.gmra.mxu0 %v37_v34 }
  0x30   :  { %206 = vmatmul.f32.gmra.mxu1 %v32_v35 }
  0x8a   :  { %v74_v36 = vpop.f32.mrf.mxu0 }
  0x8d   :  { %v100_v37 = vpop.f32.mrf.mxu1 }
  0x8e   :  { %v101_v43 = vadd.f32 %v100_v37, %v74_v36 }
  0x90   :  { %v80_v38 = vpop.f32.mrf.mxu3 }
  0x93   :  { %v126_v39 = vpop.f32.mrf.mxu2  ;;  %v77_v40 = vpop.f32.mrf.mxu0 }
  0x94   :  { %v127_v47 = vadd.f32 %v126_v39, %v101_v43 }
  0x95   :  { %v103_v41 = vpop.f32.mrf.mxu1 }
  0x96   :  { %v104_v49 = vadd.f32 %v103_v41, %v77_v40 }
  0x9b   :  { %v129_v42 = vpop.f32.mrf.mxu2  ;;  %v178_v45 = vpop.f32.mrf.mxu0 }
  0x9c   :  { %v152_v44 = vpop.f32.mrf.mxu3  ;;  %v130_v54 = vadd.f32 %v129_v42, %v104_v49  ;;  %v373_v49 = vld [vmem:[%s561_s2] ss:$0 sm:$0xff] }
  0x9d   :  { %v106_v46 = vpop.f32.mrf.mxu1  ;;  %v153_v48 = vadd.f32 %v152_v44, %v127_v47 }
  0x9e   :  { %v107_v58 = vadd.f32 %v106_v46, %v80_v38 }
  0x9f   :  { %v179_v50 = vadd.f32 %v178_v45, %v153_v48 }
  0xa3   :  { %v181_v52 = vpop.f32.mrf.mxu0  ;;  %v132_v55 = vpop.f32.mrf.mxu2 }
  0xa4   :  { %v155_v51 = vpop.f32.mrf.mxu3  ;;  %v133_v59 = vadd.f32 %v132_v55, %v107_v58 }
  0xa5   :  { %v204_v53 = vpop.f32.mrf.mxu1  ;;  %v156_v57 = vadd.f32 %v155_v51, %v130_v54  ;;  %v374_v54 = vld [vmem:[%s563_s4] ss:$0 sm:$0xff] }
  0xa6   :  { %v205_v56 = vadd.f32 %v204_v53, %v179_v50 }
  0xa7   :  { %v182_v60 = vadd.f32 %v181_v52, %v156_v57 }
  0xa8   :  { %214 = vst.msk [vmem:[#allocation2] sm:$0xff] %vm213_vm0, %v205_v56 }
  0xab   :  { %v184_v62 = vpop.f32.mrf.mxu0  ;;  %v210_v2 = vpop.f32.mrf.mxu2 }
  0xac   :  { %v158_v61 = vpop.f32.mrf.mxu3 }
  0xad   :  { %v159_v63 = vadd.f32 %v158_v61, %v133_v59  ;;  %v207_v0 = vpop.f32.mrf.mxu1 }
  0xae   :  { %v208_v1 = vadd.f32 %v207_v0, %v182_v60 }
  0xaf   :  { %v185_v3 = vadd.f32 %v184_v62, %v159_v63 }
  0xb0   :  { %215 = vst.msk [vmem:[#allocation2 + $0x8] sm:$0xff] %vm213_vm0, %v208_v1 }
  0xb1   :  { %v211_v4 = vadd.f32 %v210_v2, %v185_v3 }
  0xb3   :  { %216 = vst.msk [vmem:[#allocation2 + $0x10] sm:$0xff] %vm213_vm0, %v211_v4 }
  0xb7   :  { %v234_v5 = vld [vmem:[#allocation2 + $0x3] ss:$12 sm:$0x3]  ;;  %v219_v6 = vld [vmem:[#allocation2 + $0x1] ss:$12 sm:$0x3] }
  0xb8   :  { %236 = vrot.lane.b32.xlu1 %v234_v5, %s401_s0  ;;  %221 = vrot.lane.b32.xlu0 %v219_v6, %s401_s0  ;;  %v226_v9 = vld [vmem:[#allocation2 + $0x2] ss:$12 sm:$0x3]  ;;  %v217_v21 = vld [vmem:[#allocation2] ss:$12 sm:$0x3] }
  0xba   :  { %v250_v7 = vld [vmem:[#allocation2 + $0x5] ss:$12 sm:$0x3]  ;;  %v242_v8 = vld [vmem:[#allocation2 + $0x4] ss:$12 sm:$0x3] }
  0xbb   :  { %252 = vrot.lane.b32.xlu2 %v250_v7, %s401_s0  ;;  %v258_v10 = vld [vmem:[#allocation2 + $0x6] ss:$12 sm:$0x3]  ;;  %v274_v11 = vld [vmem:[#allocation2 + $0x8] ss:$12 sm:$0x3] }
  0xbc   :  { %v266_v12 = vld [vmem:[#allocation2 + $0x7] ss:$12 sm:$0x3]  ;;  %v282_v13 = vld [vmem:[#allocation2 + $0x9] ss:$12 sm:$0x3] }
  0xbd   :  { %v298_v14 = vld [vmem:[#allocation2 + $0xb] ss:$12 sm:$0x3]  ;;  %v290_v15 = vld [vmem:[#allocation2 + $0xa] ss:$12 sm:$0x3] }
  0xc0   :  { %244 = vrot.lane.b32.xlu1 %v242_v8, %s401_s0  ;;  %228 = vrot.lane.b32.xlu0 %v226_v9, %s401_s0 }
  0xc3   :  { %260 = vrot.lane.b32.xlu2 %v258_v10, %s401_s0 }
  0xc8   :  { %276 = vrot.lane.b32.xlu1 %v274_v11, %s401_s0  ;;  %268 = vrot.lane.b32.xlu0 %v266_v12, %s401_s0 }
  0xcb   :  { %284 = vrot.lane.b32.xlu2 %v282_v13, %s401_s0 }
  0xd0   :  { %300 = vrot.lane.b32.xlu1 %v298_v14, %s401_s0  ;;  %292 = vrot.lane.b32.xlu0 %v290_v15, %s401_s0 }
 0x115   :  { %v253_v16 = vpop.permute.xlu2 %252 }
 0x116   :  { %v255_v31 = vadd.f32 %v253_v16, %v242_v8 }
 0x11d   :  { %v261_v26 = vpop.permute.xlu2 %260 }
 0x11e   :  { %v263_v35 = vadd.f32 %v261_v26, %v250_v7 }
 0x125   :  { %v285_v39 = vpop.permute.xlu2 %284 }
 0x126   :  { %v287_v42 = vadd.f32 %v285_v39, %v274_v11 }
 0x12a   :  { %v237_v17 = vpop.permute.xlu1 %236  ;;  %v222_v18 = vpop.permute.xlu0 %221 }
 0x12b   :  { %v224_v24 = vadd.f32 %v222_v18, %v217_v21  ;;  %v239_v27 = vadd.f32 %v237_v17, %v226_v9 }
 0x132   :  { %v245_v22 = vpop.permute.xlu1 %244  ;;  %v229_v23 = vpop.permute.xlu0 %228 }
 0x133   :  { %v231_v25 = vadd.f32 %v229_v23, %v219_v6  ;;  %v247_v29 = vadd.f32 %v245_v22, %v234_v5 }
 0x135   :  { %v232_v28 = vmax.f32 %v224_v24, %v231_v25 }
 0x137   :  { %v240_v30 = vmax.f32 %v232_v28, %v239_v27 }
 0x139   :  { %v248_v32 = vmax.f32 %v240_v30, %v247_v29 }
 0x13a   :  { %v277_v33 = vpop.permute.xlu1 %276  ;;  %v269_v34 = vpop.permute.xlu0 %268 }
 0x13b   :  { %v256_v36 = vmax.f32 %v248_v32, %v255_v31  ;;  %v271_v38 = vadd.f32 %v269_v34, %v258_v10  ;;  %v279_v40 = vadd.f32 %v277_v33, %v266_v12 }
 0x13d   :  { %v264_v37 = vmax.f32 %v256_v36, %v263_v35 }
 0x13f   :  { %v272_v41 = vmax.f32 %v264_v37, %v271_v38 }
 0x141   :  { %v280_v43 = vmax.f32 %v272_v41, %v279_v40 }
 0x142   :  { %v301_v44 = vpop.permute.xlu1 %300  ;;  %v293_v45 = vpop.permute.xlu0 %292 }
 0x143   :  { %v288_v46 = vmax.f32 %v280_v43, %v287_v42  ;;  %v295_v47 = vadd.f32 %v293_v45, %v282_v13  ;;  %v303_v48 = vadd.f32 %v301_v44, %v290_v15 }
 0x145   :  { %v296_v50 = vmax.f32 %v288_v46, %v295_v47 }
 0x147   :  { %v304_v51 = vmax.f32 %v296_v50, %v303_v48 }
 0x149   :  { %v309_v52 = vadd.f32 %v373_v49, %v304_v51 }
 0x14b   :  { %v310_v53 = vmax.f32 %v309_v52, 0.0 }
 0x14d   :  { %364 = vmatmul.msk.f32.vlgmr.msra.gmra.mxu2 %vm317_vm2, %v310_v53 }
 0x1d0   :  { %v342_v55 = vpop.f32.mrf.mxu2 }
 0x1d1   :  { %v343_v56 = vadd.f32 %v374_v54, %v342_v55 }
 0x1d3   :  { %346 = vst.msk [vmem:[#allocation3] sm:$0x3] %vm345_vm3, %v343_v56 }
 0x1d4   :  { %357 = dma.vmem_to_hbm [thread:$0]  %s353_s22, 32, %s355_s25, [#allocation4]  }
 0x1d5   :  { %399 = dma.done.wait [#allocation4], 32  }
 0x1d6   :  { %400 = vsyncadd [#allocation4], 4294967264 }
 0x1d7   :  { %362 = vsyncpa [#allocation4], 1 }

</bundles_post_ra>
